<compile_context>
chip_gen: v5e
topology: v5e:2x2
jax: 0.10.0
libtpu: 0.0.40
codegen_flags: <defaults>
</compile_context>

<pallas_src>
import jax
import jax.numpy as jnp
import numpy as np
from jax import lax
from jax.experimental import pallas as pl
from jax.experimental.pallas import tpu as pltpu


def _ensemble_kernel(
    x_ref,      # (1, C, TP)  bf16  channels-first slab of spatio-temporal positions
    pm_ref,     # (TP, NB)    f32   per-tile pooling matrix (1/S where position->sample, else 0)
    ws_ref,     # (2F, C)     bf16  fused rgb+flow 1x1x1 stem weight (transposed)
    bs_ref,     # (2F, 1)     f32   fused stem bias (column)
    wh_ref,     # (2F, K)     f32   fused conv3d_0c_1x1 head weight, 0.5-ensemble folded
    bh_ref,     # (1, K)      f32   fused head bias, 0.5-ensemble folded
    lab_ref,    # (NB, 1)     int32 labels for this batch tile
    pred_ref,   # out (NB, K) f32
    loss_ref,   # out (NB, 1) f32
    pool_acc,   # scratch (2F, NB) f32 pooled-feature accumulator
):
    p = pl.program_id(1)

    @pl.when(p == 0)
    def _init():
        pool_acc[...] = jnp.zeros_like(pool_acc)

    # Fused rgb+flow 1x1x1 stem: (2F, C) @ (C, TP) on the MXU, lane-dense in TP.
    x = x_ref[0]                                                        # (C, TP) bf16
    h = jnp.dot(ws_ref[...], x, preferred_element_type=jnp.float32)     # (2F, TP) f32
    h = jnp.maximum(h + bs_ref[...], 0.0)
    # Per-sample global average pooling as a matmul (partial sums on the MXU).
    pool_acc[...] += jnp.dot(h, pm_ref[...], preferred_element_type=jnp.float32)  # (2F, NB)

    @pl.when(p == pl.num_programs(1) - 1)
    def _finalize():
        # Head + 0.5/0.5 ensemble (already folded into wh/bh on the host).
        pool_t = jnp.transpose(pool_acc[...])                            # (NB, 2F) tiny, once
        pred = jnp.dot(pool_t, wh_ref[...],
                       preferred_element_type=jnp.float32) + bh_ref[...]  # (NB, K)
        pred_ref[...] = pred

        # F.cross_entropy(pred, label, reduction='none')
        # TODO(synk): labels outside [0, K) give a finite wrong loss instead of
        # torch's error/ignore_index behaviour.
        lab = lab_ref[...]                                               # (NB, 1) int32
        m = jnp.max(pred, axis=-1, keepdims=True)
        lse = m + jnp.log(jnp.sum(jnp.exp(pred - m), axis=-1, keepdims=True))
        cls = lax.broadcasted_iota(jnp.int32, pred.shape, 1)
        picked = jnp.sum(jnp.where(cls == lab, pred, 0.0), axis=-1, keepdims=True)
        loss_ref[...] = lse - picked


def ensemble_i3d_rgb_forward(x_ncdhw, label, params, *, nb=8, tp=512):
    """x_ncdhw: (N, C, T, H, W) float32; label: (N,) int32."""
    N, C, T, H, W = x_ncdhw.shape
    S = T * H * W
    F = params["ws_r"].shape[1]
    K = params["wh_r"].shape[1]
    F2 = 2 * F

    NB = nb                                  # samples per batch tile (sublane-friendly)
    NBT = -(-N // NB)                        # batch tiles ("parallel" grid axis)
    N_pad = NBT * NB
    P = NB * S                               # flattened positions per batch tile
    n_p = -(-P // tp)                        # S-tiles ("arbitrary" reduction axis)
    PP = n_p * tp

    # --- host-side parameter fusion (exact math, done once) ---
    ws_t = jnp.concatenate([params["ws_r"], params["ws_f"]], axis=1).T        # (2F, C)
    ws_t = ws_t.astype(jnp.bfloat16)
    bs_c = jnp.concatenate([params["bs_r"], params["bs_f"]], axis=1).T        # (2F, 1)
    wh_c = 0.5 * jnp.concatenate([params["wh_r"], params["wh_f"]], axis=0)    # (2F, K)
    bh_c = 0.5 * (params["bh_r"] + params["bh_f"])                            # (1, K)

    # --- x: NCDHW -> channels-first flat (NBT, C, NB*S), padded, bf16 ---
    x = x_ncdhw.reshape(N, C, S)
    if N_pad != N:
        x = jnp.pad(x, ((0, N_pad - N), (0, 0), (0, 0)))
    x = x.reshape(NBT, NB, C, S).transpose(0, 2, 1, 3).reshape(NBT, C, P)
    if PP != P:
        x = jnp.pad(x, ((0, 0), (0, 0), (0, PP - P)))
    x = x.astype(jnp.bfloat16)

    # Pooling matrix: pm[j, n] = 1/S if flattened position j belongs to local
    # sample n, else 0 (padded positions are all-zero rows).
    pos_sample = np.arange(PP) // S
    pm = (pos_sample[:, None] == np.arange(NB)[None, :]).astype(np.float32) / S
    pm = jnp.asarray(pm)                                                      # (PP, NB)

    lab = label.astype(jnp.int32)
    if N_pad != N:
        lab = jnp.pad(lab, (0, N_pad - N))
    lab = lab.reshape(N_pad, 1)

    cost = pl.CostEstimate(
        flops=int(2 * NBT * PP * (F2 * C + F2 * NB) + 2 * N_pad * F2 * K),
        transcendentals=int(N_pad * (K + 1)),
        bytes_accessed=int(x.size * 2 + pm.size * 4 + ws_t.size * 2 +
                           bs_c.size * 4 + wh_c.size * 4 + bh_c.size * 4 +
                           lab.size * 4 + N_pad * (K + 1) * 4),
    )

    pred, loss = pl.pallas_call(
        _ensemble_kernel,
        out_shape=(
            jax.ShapeDtypeStruct((N_pad, K), jnp.float32),
            jax.ShapeDtypeStruct((N_pad, 1), jnp.float32),
        ),
        grid_spec=pltpu.PrefetchScalarGridSpec(
            num_scalar_prefetch=0,
            grid=(NBT, n_p),
            in_specs=[
                pl.BlockSpec((1, C, tp), lambda b, p: (b, 0, p)),   # x (lane-dense)
                pl.BlockSpec((tp, NB), lambda b, p: (p, 0)),        # pooling matrix tile
                pl.BlockSpec((F2, C), lambda b, p: (0, 0)),         # fused stem W^T
                pl.BlockSpec((F2, 1), lambda b, p: (0, 0)),         # fused stem bias
                pl.BlockSpec((F2, K), lambda b, p: (0, 0)),         # fused head W (0.5 folded)
                pl.BlockSpec((1, K), lambda b, p: (0, 0)),          # fused head bias
                pl.BlockSpec((NB, 1), lambda b, p: (b, 0)),         # labels
            ],
            out_specs=[
                pl.BlockSpec((NB, K), lambda b, p: (b, 0)),         # pred (lane-dense slab)
                pl.BlockSpec((NB, 1), lambda b, p: (b, 0)),         # loss
            ],
            scratch_shapes=[pltpu.VMEM((F2, NB), jnp.float32)],
        ),
        compiler_params=pltpu.CompilerParams(
            dimension_semantics=("parallel", "arbitrary")),
        cost_estimate=cost,
    )(x, pm, ws_t, bs_c, wh_c, bh_c, lab)

    pred = pred[:N]
    loss_dict = {"loss": loss[:N, 0]}
    return pred, loss_dict


def _reference(x_ncdhw, label, params):
    """Pure-JAX reference matching the kernel semantics (incl. bf16 cast of x / stem W)."""
    N, C, T, H, W = x_ncdhw.shape
    S = T * H * W
    xb = x_ncdhw.reshape(N, C, S).astype(jnp.bfloat16).astype(jnp.float32)

    def one_model(ws, bs, wh, bh):
        wsb = ws.astype(jnp.bfloat16).astype(jnp.float32)
        h = jnp.maximum(jnp.einsum("ncs,cf->nsf", xb, wsb) + bs, 0.0)
        pool = jnp.mean(h, axis=1)                 # (N, F)
        return pool @ wh + bh                      # (N, K)

    lr = one_model(params["ws_r"], params["bs_r"], params["wh_r"], params["bh_r"])
    lf = one_model(params["ws_f"], params["bs_f"], params["wh_f"], params["bh_f"])
    pred = 0.5 * lr + 0.5 * lf
    logp = jax.nn.log_softmax(pred, axis=-1)
    loss = -jnp.take_along_axis(logp, label[:, None], axis=-1)[:, 0]
    return pred, loss


if __name__ == "__main__":
    # Small shapes consistent with a video-clip input (N, C, T, H, W)
    N, C, T, H, W = 2, 3, 4, 8, 8
    FEAT, CLASS_NUM = 32, 12

    key = jax.random.PRNGKey(0)
    kx, kl, k1, k2, k3, k4, k5, k6, k7, k8 = jax.random.split(key, 10)

    x = jax.random.normal(kx, (N, C, T, H, W), dtype=jnp.float32)
    label = jax.random.randint(kl, (N,), 0, CLASS_NUM, dtype=jnp.int32)

    s = 0.1
    params = {
        "ws_r": s * jax.random.normal(k1, (C, FEAT), jnp.float32),
        "bs_r": s * jax.random.normal(k2, (1, FEAT), jnp.float32),
        "wh_r": s * jax.random.normal(k3, (FEAT, CLASS_NUM), jnp.float32),
        "bh_r": s * jax.random.normal(k4, (1, CLASS_NUM), jnp.float32),
        "ws_f": s * jax.random.normal(k5, (C, FEAT), jnp.float32),
        "bs_f": s * jax.random.normal(k6, (1, FEAT), jnp.float32),
        "wh_f": s * jax.random.normal(k7, (FEAT, CLASS_NUM), jnp.float32),
        "bh_f": s * jax.random.normal(k8, (1, CLASS_NUM), jnp.float32),
    }

    pred, loss_dict = ensemble_i3d_rgb_forward(x, label, params)
    jax.block_until_ready((pred, loss_dict["loss"]))

    pred_ref, loss_ref = _reference(x, label, params)
    assert np.allclose(np.asarray(pred), np.asarray(pred_ref), atol=2e-3, rtol=2e-3)
    assert np.allclose(np.asarray(loss_dict["loss"]), np.asarray(loss_ref),
                       atol=2e-3, rtol=2e-3)
    print("KERNEL_OK")
</pallas_src>

<mosaic_0001>
module attributes {stable_mosaic.version = 11 : i64} {
  func.func @_ensemble_kernel(%arg0: i32, %arg1: i32, %arg2: memref<1x3x512xbf16, #tpu.memory_space<vmem>>, %arg3: memref<512x8xf32, #tpu.memory_space<vmem>>, %arg4: memref<64x3xbf16, #tpu.memory_space<vmem>>, %arg5: memref<64x1xf32, #tpu.memory_space<vmem>>, %arg6: memref<64x12xf32, #tpu.memory_space<vmem>>, %arg7: memref<1x12xf32, #tpu.memory_space<vmem>>, %arg8: memref<8x1xi32, #tpu.memory_space<vmem>>, %arg9: memref<8x12xf32, #tpu.memory_space<vmem>>, %arg10: memref<8x1xf32, #tpu.memory_space<vmem>>, %arg11: memref<64x8xf32, #tpu.memory_space<vmem>>) attributes {dimension_semantics = [#tpu.dimension_semantics<parallel>, #tpu.dimension_semantics<arbitrary>], iteration_bounds = array<i64: 1, 4>, scalar_prefetch = 0 : i64, scratch_operands = 1 : i64, tpu.core_type = #tpu.core_type<tc>, window_params = [{transform_indices = @transform_0, window_bounds = array<i64: 1, 3, 512>}, {transform_indices = @transform_1, window_bounds = array<i64: 512, 8>}, {pipeline_mode = #tpu.pipeline_mode<synchronous>, transform_indices = @transform_2, window_bounds = array<i64: 64, 3>}, {pipeline_mode = #tpu.pipeline_mode<synchronous>, transform_indices = @transform_3, window_bounds = array<i64: 64, 1>}, {pipeline_mode = #tpu.pipeline_mode<synchronous>, transform_indices = @transform_4, window_bounds = array<i64: 64, 12>}, {pipeline_mode = #tpu.pipeline_mode<synchronous>, transform_indices = @transform_5, window_bounds = array<i64: 1, 12>}, {transform_indices = @transform_6, window_bounds = array<i64: 8, 1>}, {transform_indices = @transform_7, window_bounds = array<i64: 8, 12>}, {transform_indices = @transform_8, window_bounds = array<i64: 8, 1>}]} {
    %c0_i32 = arith.constant 0 : i32
    %0 = arith.cmpi eq, %arg1, %c0_i32 : i32
    %1 = arith.extui %0 : i1 to i32
    %c0_i32_0 = arith.constant 0 : i32
    %2 = arith.cmpi ne, %1, %c0_i32_0 : i32
    scf.if %2 {
      %cst_16 = arith.constant 0.000000e+00 : f32
      %20 = vector.broadcast %cst_16 : f32 to vector<64x8xf32>
      %c0_17 = arith.constant 0 : index
      %c0_18 = arith.constant 0 : index
      %21 = vector.load %arg11[%c0_17, %c0_18] : memref<64x8xf32, #tpu.memory_space<vmem>>, vector<64x8xf32>
      tpu.vector_store %arg11[%c0_17, %c0_18], %20 {strides = array<i32>} : memref<64x8xf32, #tpu.memory_space<vmem>>, vector<64x8xf32>,
    } else {
    }
    %c0 = arith.constant 0 : index
    %c0_1 = arith.constant 0 : index
    %c0_2 = arith.constant 0 : index
    %3 = vector.load %arg2[%c0, %c0_1, %c0_2] : memref<1x3x512xbf16, #tpu.memory_space<vmem>>, vector<1x3x512xbf16>
    %4 = vector.shape_cast %3 : vector<1x3x512xbf16> to vector<3x512xbf16>
    %c0_3 = arith.constant 0 : index
    %c0_4 = arith.constant 0 : index
    %5 = vector.load %arg4[%c0_3, %c0_4] : memref<64x3xbf16, #tpu.memory_space<vmem>>, vector<64x3xbf16>
    %cst = arith.constant dense<0.000000e+00> : vector<64x512xf32>
    %6 = tpu.matmul %5, %4, %cst {dimension_numbers = #tpu.dot_dimension_numbers<[1], [0], [0], [1], [0, 0, 1, 1], [], []>} : vector<64x3xbf16>, vector<3x512xbf16>, vector<64x512xf32> -> vector<64x512xf32>
    %c0_5 = arith.constant 0 : index
    %c0_6 = arith.constant 0 : index
    %7 = vector.load %arg5[%c0_5, %c0_6] : memref<64x1xf32, #tpu.memory_space<vmem>>, vector<64x1xf32>
    %8 = vector.broadcast %7 : vector<64x1xf32> to vector<64x512xf32>
    %9 = arith.addf %6, %8 : vector<64x512xf32>
    %cst_7 = arith.constant 0.000000e+00 : f32
    %10 = vector.broadcast %cst_7 : f32 to vector<64x512xf32>
    %11 = arith.maximumf %9, %10 : vector<64x512xf32>
    %c0_8 = arith.constant 0 : index
    %c0_9 = arith.constant 0 : index
    %12 = vector.load %arg11[%c0_8, %c0_9] : memref<64x8xf32, #tpu.memory_space<vmem>>, vector<64x8xf32>
    %c0_10 = arith.constant 0 : index
    %c0_11 = arith.constant 0 : index
    %13 = vector.load %arg3[%c0_10, %c0_11] : memref<512x8xf32, #tpu.memory_space<vmem>>, vector<512x8xf32>
    %cst_12 = arith.constant dense<0.000000e+00> : vector<64x8xf32>
    %14 = tpu.matmul %11, %13, %cst_12 {dimension_numbers = #tpu.dot_dimension_numbers<[1], [0], [0], [1], [0, 0, 1, 1], [], []>} : vector<64x512xf32>, vector<512x8xf32>, vector<64x8xf32> -> vector<64x8xf32>
    %15 = arith.addf %12, %14 : vector<64x8xf32>
    %c0_13 = arith.constant 0 : index
    %c0_14 = arith.constant 0 : index
    %16 = vector.load %arg11[%c0_13, %c0_14] : memref<64x8xf32, #tpu.memory_space<vmem>>, vector<64x8xf32>
    tpu.vector_store %arg11[%c0_13, %c0_14], %15 {strides = array<i32>} : memref<64x8xf32, #tpu.memory_space<vmem>>, vector<64x8xf32>,
    %c3_i32 = arith.constant 3 : i32
    %17 = arith.cmpi eq, %arg1, %c3_i32 : i32
    %18 = arith.extui %17 : i1 to i32
    %c0_i32_15 = arith.constant 0 : i32
    %19 = arith.cmpi ne, %18, %c0_i32_15 : i32
    scf.if %19 {
      %c0_16 = arith.constant 0 : index
      %c0_17 = arith.constant 0 : index
      %20 = vector.load %arg11[%c0_16, %c0_17] : memref<64x8xf32, #tpu.memory_space<vmem>>, vector<64x8xf32>
      %21 = tpu.transpose %20, [1, 0] : vector<64x8xf32> -> vector<8x64xf32>
      %c0_18 = arith.constant 0 : index
      %c0_19 = arith.constant 0 : index
      %22 = vector.load %arg6[%c0_18, %c0_19] : memref<64x12xf32, #tpu.memory_space<vmem>>, vector<64x12xf32>
      %cst_20 = arith.constant dense<0.000000e+00> : vector<8x12xf32>
      %23 = tpu.matmul %21, %22, %cst_20 {dimension_numbers = #tpu.dot_dimension_numbers<[1], [0], [0], [1], [0, 0, 1, 1], [], []>} : vector<8x64xf32>, vector<64x12xf32>, vector<8x12xf32> -> vector<8x12xf32>
      %c0_21 = arith.constant 0 : index
      %c0_22 = arith.constant 0 : index
      %24 = vector.load %arg7[%c0_21, %c0_22] : memref<1x12xf32, #tpu.memory_space<vmem>>, vector<1x12xf32>
      %25 = vector.broadcast %24 : vector<1x12xf32> to vector<8x12xf32>
      %26 = arith.addf %23, %25 : vector<8x12xf32>
      %c0_23 = arith.constant 0 : index
      %c0_24 = arith.constant 0 : index
      %27 = vector.load %arg9[%c0_23, %c0_24] : memref<8x12xf32, #tpu.memory_space<vmem>>, vector<8x12xf32>
      tpu.vector_store %arg9[%c0_23, %c0_24], %26 {strides = array<i32>} : memref<8x12xf32, #tpu.memory_space<vmem>>, vector<8x12xf32>,
      %c0_25 = arith.constant 0 : index
      %c0_26 = arith.constant 0 : index
      %28 = vector.load %arg8[%c0_25, %c0_26] : memref<8x1xi32, #tpu.memory_space<vmem>>, vector<8x1xi32>
      %cst_27 = arith.constant dense<0xFF800000> : vector<8xf32>
      %29 = vector.multi_reduction <maximumf>, %26, %cst_27 [1] : vector<8x12xf32> to vector<8xf32>
      %30 = vector.shape_cast %29 : vector<8xf32> to vector<8x1xf32>
      %31 = vector.broadcast %30 : vector<8x1xf32> to vector<8x12xf32>
      %32 = arith.subf %26, %31 : vector<8x12xf32>
      %33 = math.exp %32 : vector<8x12xf32>
      %cst_28 = arith.constant dense<0.000000e+00> : vector<8xf32>
      %34 = vector.multi_reduction <add>, %33, %cst_28 [1] : vector<8x12xf32> to vector<8xf32>
      %35 = vector.shape_cast %34 : vector<8xf32> to vector<8x1xf32>
      %36 = math.log %35 : vector<8x1xf32>
      %37 = arith.addf %30, %36 : vector<8x1xf32>
      %38 = tpu.iota {dimensions = array<i32: 1>} : vector<8x12xi32>
      %39 = vector.broadcast %28 : vector<8x1xi32> to vector<8x12xi32>
      %40 = arith.cmpi eq, %38, %39 : vector<8x12xi32>
      %cst_29 = arith.constant 0.000000e+00 : f32
      %41 = vector.broadcast %cst_29 : f32 to vector<8x12xf32>
      %42 = arith.select %40, %26, %41 : vector<8x12xi1>, vector<8x12xf32>
      %cst_30 = arith.constant dense<0.000000e+00> : vector<8xf32>
      %43 = vector.multi_reduction <add>, %42, %cst_30 [1] : vector<8x12xf32> to vector<8xf32>
      %44 = vector.shape_cast %43 : vector<8xf32> to vector<8x1xf32>
      %45 = arith.subf %37, %44 : vector<8x1xf32>
      %c0_31 = arith.constant 0 : index
      %c0_32 = arith.constant 0 : index
      %46 = vector.load %arg10[%c0_31, %c0_32] : memref<8x1xf32, #tpu.memory_space<vmem>>, vector<8x1xf32>
      tpu.vector_store %arg10[%c0_31, %c0_32], %45 {strides = array<i32>} : memref<8x1xf32, #tpu.memory_space<vmem>>, vector<8x1xf32>,
    } else {
    }
    return
  }
  func.func @transform_0(%arg0: i32, %arg1: i32) -> (i32, i32, i32) {
    %c0_i32 = arith.constant 0 : i32
    %c0_i32_0 = arith.constant 0 : i32
    return %arg0, %c0_i32, %arg1 : i32, i32, i32
  }
  func.func @transform_1(%arg0: i32, %arg1: i32) -> (i32, i32) {
    %c0_i32 = arith.constant 0 : i32
    %c0_i32_0 = arith.constant 0 : i32
    return %arg1, %c0_i32 : i32, i32
  }
  func.func @transform_2(%arg0: i32, %arg1: i32) -> (i32, i32) {
    %c0_i32 = arith.constant 0 : i32
    %c0_i32_0 = arith.constant 0 : i32
    %c0_i32_1 = arith.constant 0 : i32
    return %c0_i32, %c0_i32_0 : i32, i32
  }
  func.func @transform_3(%arg0: i32, %arg1: i32) -> (i32, i32) {
    %c0_i32 = arith.constant 0 : i32
    %c0_i32_0 = arith.constant 0 : i32
    %c0_i32_1 = arith.constant 0 : i32
    return %c0_i32, %c0_i32_0 : i32, i32
  }
  func.func @transform_4(%arg0: i32, %arg1: i32) -> (i32, i32) {
    %c0_i32 = arith.constant 0 : i32
    %c0_i32_0 = arith.constant 0 : i32
    %c0_i32_1 = arith.constant 0 : i32
    return %c0_i32, %c0_i32_0 : i32, i32
  }
  func.func @transform_5(%arg0: i32, %arg1: i32) -> (i32, i32) {
    %c0_i32 = arith.constant 0 : i32
    %c0_i32_0 = arith.constant 0 : i32
    %c0_i32_1 = arith.constant 0 : i32
    return %c0_i32, %c0_i32_0 : i32, i32
  }
  func.func @transform_6(%arg0: i32, %arg1: i32) -> (i32, i32) {
    %c0_i32 = arith.constant 0 : i32
    %c0_i32_0 = arith.constant 0 : i32
    return %arg0, %c0_i32 : i32, i32
  }
  func.func @transform_7(%arg0: i32, %arg1: i32) -> (i32, i32) {
    %c0_i32 = arith.constant 0 : i32
    %c0_i32_0 = arith.constant 0 : i32
    return %arg0, %c0_i32 : i32, i32
  }
  func.func @transform_8(%arg0: i32, %arg1: i32) -> (i32, i32) {
    %c0_i32 = arith.constant 0 : i32
    %c0_i32_0 = arith.constant 0 : i32
    return %arg0, %c0_i32 : i32, i32
  }
}

</mosaic_0001>

<bundles_post_ra>
// kernel: tpu_custom_call.1
= control target key start
LH: loop header
LB: loop body
LE: loop exit
PB: predicated region body
PF: predicated region fallthrough
CT: control target
= control target key end

     0   :  { %14 = vsyncpa [#allocation4], 0  ;;  %s1333_s27 = smov 0   ;;  %s1335_s28 = smov 0   ;;  %s1541_s0 = inlined_call_operand.vmem [shape: bf16[1,3,2048], index: 0, kind: input, shape index: {}]   ;;  %s1542_s1 = inlined_call_operand.vmem [shape: f32[2048,8], index: 1, kind: input, shape index: {}]   ;;  %s1543_s2 = inlined_call_operand.vmem [shape: bf16[64,3], index: 2, kind: input, shape index: {}]   ;;  %s1544_s3 = inlined_call_operand.vmem [shape: f32[64,1], index: 3, kind: input, shape index: {}]   ;;  %s1545_s4 = inlined_call_operand.vmem [shape: f32[64,12], index: 4, kind: input, shape index: {}]   ;;  %s1546_s5 = inlined_call_operand.vmem [shape: f32[1,12], index: 5, kind: input, shape index: {}]   ;;  %s1547_s6 = inlined_call_operand.vmem [shape: s32[8,1], index: 6, kind: input, shape index: {}]   ;;  %s1548_s7 = inlined_call_operand.hbm [shape: f32[8,12], index: 7, kind: output, shape index: {0}]   ;;  %s1549_s8 = inlined_call_operand.vmem [shape: f32[8,1], index: 8, kind: output, shape index: {1}]  }
   0x1   :  { %s1337_s29 = smov 0  }
   0x2 LB: > { %s1128_s30 = sadd.s32 4294967295, %s1281_s29   ;;  %s29_s9 = sadd.s32 1, %s1277_s28  ;;  %s1281_s29 = sphi %s1337_s29, %s20_s29   ;;  %s1277_s28 = sphi %s1335_s28, %s1551_s28   ;;  %s1273_s27 = sphi %s1333_s27, %s1550_s27  }
   0x3   : > { %p30_p0 = scmp.ge.s32.totalorder %s29_s9, 4  ;;  %p1132_p1 = scmp.ge.s32.totalorder %s1281_s29, 1 }
   0x4   : > { %p305_p2 = scmp.lt.s32.totalorder %s1281_s29, 5 }
   0x5   : > { %s1553_s9 = smov (%p30_p0, %s29_s9), 0 }
   0x6   : > { %p306_p3 = pnand %p1132_p1, %p305_p2 }
   0x7   : > { %s1133_s10 = sshll.u32 (!%p306_p3), %s1273_s27, 2  ;;  %s1135_s11 = sshll.u32 (!%p306_p3), %s1273_s27, 6 }
   0x8   : > { %309 = sbr.rel (%p306_p3) target bundleno = 939 (0x3ab), region = 48  ;;  %p354_p4 = scmp.lt.s32.totalorder (!%p306_p3), %s1133_s10, 15 }
   0x9   : > { %p362_p5 = scmp.lt.s32.totalorder (!%p306_p3), %s1135_s11, 255  ;;  %p1137_p6 = scmp.ne.s32.totalorder (!%p306_p3), %s1273_s27, 0 }
   0xd   : > { %s1555_s10 = smov (!%p354_p4, %s1133_s10), 15  ;;  %s1557_s11 = smov (!%p362_p5, %s1135_s11), 255 }
   0xe   : > { %s1134_s12 = sshll.u32 %s1555_s10, 1  ;;  %s1136_s16 = sshll.u32 %s1557_s11, 3 }
   0xf   : > { %s359_s15 = scalar_lea.vmem %s1541_s0, %s1134_s12  ;;  %s1362_s19 = scalar_lea.vmem %s1542_s1, %s1136_s16 }
  0x10   : > { %379 = sbr.rel (%p1137_p6) target bundleno = 30 (0x1e), region = 52 }
  0x15   : > { %vm380_vm0 = vcmask 64512   ;;  %v1283_v0 = vmov 0.0  }
  0x16   : > { %381 = vst.msk [vmem:[#allocation2] sm:$0xff] %vm380_vm0, %v1283_v0 }
  0x17   : > { %382 = vst.msk [vmem:[#allocation2 + $0x8] sm:$0xff] %vm380_vm0, %v1283_v0 }
  0x18   : > { %383 = vst.msk [vmem:[#allocation2 + $0x10] sm:$0xff] %vm380_vm0, %v1283_v0 }
  0x19   : > { %384 = vst.msk [vmem:[#allocation2 + $0x18] sm:$0xff] %vm380_vm0, %v1283_v0 }
  0x1a   : > { %385 = vst.msk [vmem:[#allocation2 + $0x20] sm:$0xff] %vm380_vm0, %v1283_v0 }
  0x1b   : > { %386 = vst.msk [vmem:[#allocation2 + $0x28] sm:$0xff] %vm380_vm0, %v1283_v0 }
  0x1c   : > { %387 = vst.msk [vmem:[#allocation2 + $0x30] sm:$0xff] %vm380_vm0, %v1283_v0 }
  0x1d   : > { %388 = vst.msk [vmem:[#allocation2 + $0x38] sm:$0xff] %vm380_vm0, %v1283_v0 }
  0x1e PF: > { %v389_v1 = vld [vmem:[%s359_s15] sm:$0xff]  ;;  %vm485_vm1 = vcmask 1040384   ;;  %v1284_v2 = vmov 0   ;;  %v400_v4 = vld [vmem:[%s1544_s3 + $0x10] sm:$0xff]  ;;  %vm486_vm2 = vcmask 1041408   ;;  %v1285_v5 = vmov 65535  }
  0x1f   : > { %467 = vst [vmem:[#allocation1] ss:$4 sm:$0xff] %v389_v1  ;;  %1217 = vset.pattern.permute.xlu0 %v1284_v2  ;;  %v398_v3 = vld [vmem:[%s1544_s3] sm:$0xff]  ;;  %1218 = vset.pattern.permute.xlu1 %v1284_v2  ;;  %v487_v6 = vsel %vm485_vm1, 4294967295, %v1285_v5  ;;  %v399_v8 = vld [vmem:[%s1544_s3 + $0x8] sm:$0xff]  ;;  %v401_v18 = vld [vmem:[%s1544_s3 + $0x18] sm:$0xff] }
  0x20   : > { %408 = vperm.xlu0 %1217, %v398_v3   ;;  %1219 = vset.pattern.permute.xlu2 %v1284_v2  ;;  %v488_v7 = vsel %vm486_vm2, %v487_v6, 0  ;;  %v1177_v17 = vld [vmem:[%s1543_s2] sm:$0xff]  ;;  %vm472_vm3 = vcmask 23552   ;;  %v404_v19 = vld [vmem:[%s1544_s3 + $0x30] sm:$0xff]  ;;  %v405_v20 = vld [vmem:[%s1544_s3 + $0x38] sm:$0xff]  ;;  %vm889_vm4 = vcmask 64512  }
  0x21   : > { %418 = vperm.xlu1 %1218, %v400_v4   ;;  %v1178_v21 = vld [vmem:[%s1543_s2 + $0x8] sm:$0xff]  ;;  %v402_v22 = vld [vmem:[%s1544_s3 + $0x20] sm:$0xff]  ;;  %v700_v23 = vld [vmem:[%s1362_s19 + $0x178] sm:$0xff]  ;;  %p1170_p7 = scmp.ne.s32.totalorder %s1273_s27, 3 }
  0x22   : > { %428 = vperm.xlu2 %1219, %v402_v22   ;;  %v716_v24 = vld [vmem:[%s1362_s19 + $0x1f8] sm:$0xff]  ;;  %v699_v27 = vld [vmem:[%s1362_s19 + $0x170] sm:$0xff]  ;;  %v698_v31 = vld [vmem:[%s1362_s19 + $0x168] sm:$0xff] }
  0x23   : > { %v668_v25 = vld [vmem:[%s1362_s19 + $0x78] sm:$0xff]  ;;  %v715_v28 = vld [vmem:[%s1362_s19 + $0x1f0] sm:$0xff]  ;;  %v714_v32 = vld [vmem:[%s1362_s19 + $0x1e8] sm:$0xff] }
  0x24   : > { %v684_v26 = vld [vmem:[%s1362_s19 + $0xf8] sm:$0xff]  ;;  %v667_v29 = vld [vmem:[%s1362_s19 + $0x70] sm:$0xff]  ;;  %v666_v33 = vld [vmem:[%s1362_s19 + $0x68] sm:$0xff] }
  0x25   : > { %v683_v30 = vld [vmem:[%s1362_s19 + $0xf0] sm:$0xff]  ;;  %v682_v34 = vld [vmem:[%s1362_s19 + $0xe8] sm:$0xff]  ;;  %v697_v35 = vld [vmem:[%s1362_s19 + $0x160] sm:$0xff] }
  0x26   : > { %v468_v9 = vld.sshfl [vmem:[#allocation1] sm:$0xff pattern:$0x73625140]  ;;  %v469_v10 = vld.sshfl [vmem:[#allocation1 + $0x8] sm:$0xff pattern:$0x73625140] }
  0x27   : > { %v489_v11 = vand.u32 %v488_v7, %v468_v9  ;;  %v491_v12 = vand.u32 %v488_v7, %v469_v10  ;;  %v470_v13 = vld.sshfl [vmem:[#allocation1 + $0x10] sm:$0xff pattern:$0x73625140]  ;;  %v471_v14 = vld.sshfl [vmem:[#allocation1 + $0x18] sm:$0xff pattern:$0x73625140] }
  0x28   : > { %v493_v15 = vand.u32 %v488_v7, %v470_v13  ;;  %v495_v16 = vand.u32 %v488_v7, %v471_v14  ;;  %413 = vperm.xlu0 %1217, %v399_v8   ;;  %v713_v36 = vld [vmem:[%s1362_s19 + $0x1e0] sm:$0xff]  ;;  %v403_v38 = vld [vmem:[%s1544_s3 + $0x28] sm:$0xff]  ;;  %v696_v40 = vld [vmem:[%s1362_s19 + $0x158] sm:$0xff] }
  0x29   : > { %504 = vmatpush.bf16.msra.mxu0 %v489_v11  ;;  %533 = vmatpush.bf16.msra.mxu1 %v491_v12  ;;  %v665_v37 = vld [vmem:[%s1362_s19 + $0x60] sm:$0xff]  ;;  %v712_v41 = vld [vmem:[%s1362_s19 + $0x1d8] sm:$0xff]  ;;  %v695_v44 = vld [vmem:[%s1362_s19 + $0x150] sm:$0xff] }
  0x2a   : > { %562 = vmatpush.bf16.msra.mxu2 %v493_v15  ;;  %591 = vmatpush.bf16.msra.mxu3 %v495_v16  ;;  %v681_v39 = vld [vmem:[%s1362_s19 + $0xe0] sm:$0xff]  ;;  %v664_v42 = vld [vmem:[%s1362_s19 + $0x58] sm:$0xff]  ;;  %v711_v45 = vld [vmem:[%s1362_s19 + $0x1d0] sm:$0xff] }
  0x2b   : > { %423 = vperm.xlu1 %1218, %v401_v18   ;;  %v680_v43 = vld [vmem:[%s1362_s19 + $0xd8] sm:$0xff]  ;;  %433 = vperm.xlu2 %1219, %v403_v38   ;;  %v663_v46 = vld [vmem:[%s1362_s19 + $0x50] sm:$0xff]  ;;  %v694_v49 = vld [vmem:[%s1362_s19 + $0x148] sm:$0xff] }
  0x2c   : > { %1154 = vmatmul.msk.bf16.vlgmr.msra.gmra.mxu0 %vm472_vm3, %v1177_v17  ;;  %1158 = vmatmul.msk.bf16.vlgmr.msra.gmra.mxu1 %vm472_vm3, %v1177_v17  ;;  %v679_v47 = vld [vmem:[%s1362_s19 + $0xd0] sm:$0xff]  ;;  %v710_v50 = vld [vmem:[%s1362_s19 + $0x1c8] sm:$0xff]  ;;  %v693_v53 = vld [vmem:[%s1362_s19 + $0x140] sm:$0xff] }
  0x2d   : > { %1162 = vmatmul.msk.bf16.vlgmr.msra.gmra.mxu2 %vm472_vm3, %v1177_v17  ;;  %1166 = vmatmul.msk.bf16.vlgmr.msra.gmra.mxu3 %vm472_vm3, %v1177_v17  ;;  %v1179_v48 = vld [vmem:[%s1543_s2 + $0x10] sm:$0xff]  ;;  %v662_v51 = vld [vmem:[%s1362_s19 + $0x48] sm:$0xff]  ;;  %v709_v54 = vld [vmem:[%s1362_s19 + $0x1c0] sm:$0xff] }
  0x2e   : > { %799 = vmatpush.msrb.mxu2 %v700_v23  ;;  %840 = vmatpush.msrb.mxu3 %v716_v24  ;;  %v678_v52 = vld [vmem:[%s1362_s19 + $0xc8] sm:$0xff]  ;;  %v661_v55 = vld [vmem:[%s1362_s19 + $0x40] sm:$0xff]  ;;  %v692_v57 = vld [vmem:[%s1362_s19 + $0x138] sm:$0xff] }
  0x2f   : > { %717 = vmatpush.msrb.mxu0 %v668_v25  ;;  %758 = vmatpush.msrb.mxu1 %v684_v26  ;;  %v677_v56 = vld [vmem:[%s1362_s19 + $0xc0] sm:$0xff]  ;;  %v708_v58 = vld [vmem:[%s1362_s19 + $0x1b8] sm:$0xff]  ;;  %v691_v61 = vld [vmem:[%s1362_s19 + $0x130] sm:$0xff] }
  0x30   : > { %438 = vperm.xlu0 %1217, %v404_v19   ;;  %800 = vmatpush.msrb.mxu2 %v699_v27  ;;  %v660_v59 = vld [vmem:[%s1362_s19 + $0x38] sm:$0xff]  ;;  %v707_v62 = vld [vmem:[%s1362_s19 + $0x1b0] sm:$0xff]  ;;  %v690_v1 = vld [vmem:[%s1362_s19 + $0x128] sm:$0xff] }
  0x31   : > { %841 = vmatpush.msrb.mxu3 %v715_v28  ;;  %718 = vmatpush.msrb.mxu0 %v667_v29  ;;  %v676_v60 = vld [vmem:[%s1362_s19 + $0xb8] sm:$0xff]  ;;  %v659_v63 = vld [vmem:[%s1362_s19 + $0x30] sm:$0xff]  ;;  %v706_v2 = vld [vmem:[%s1362_s19 + $0x1a8] sm:$0xff] }
  0x32   : > { %759 = vmatpush.msrb.mxu1 %v683_v30  ;;  %801 = vmatpush.msrb.mxu2 %v698_v31  ;;  %v675_v0 = vld [vmem:[%s1362_s19 + $0xb0] sm:$0xff]  ;;  %v1180_v3 = vld [vmem:[%s1543_s2 + $0x18] sm:$0xff]  ;;  %v658_v4 = vld [vmem:[%s1362_s19 + $0x28] sm:$0xff] }
  0x33   : > { %443 = vperm.xlu1 %1218, %v405_v20   ;;  %842 = vmatpush.msrb.mxu3 %v714_v32  ;;  %v674_v5 = vld [vmem:[%s1362_s19 + $0xa8] sm:$0xff]  ;;  %v689_v6 = vld [vmem:[%s1362_s19 + $0x120] sm:$0xff]  ;;  %v688_v10 = vld [vmem:[%s1362_s19 + $0x118] sm:$0xff] }
  0x34   : > { %719 = vmatpush.msrb.mxu0 %v666_v33  ;;  %760 = vmatpush.msrb.mxu1 %v682_v34  ;;  %v705_v7 = vld [vmem:[%s1362_s19 + $0x1a0] sm:$0xff]  ;;  %v704_v11 = vld [vmem:[%s1362_s19 + $0x198] sm:$0xff]  ;;  %v687_v14 = vld [vmem:[%s1362_s19 + $0x110] sm:$0xff] }
  0x35   : > { %802 = vmatpush.msrb.mxu2 %v697_v35  ;;  %843 = vmatpush.msrb.mxu3 %v713_v36  ;;  %v657_v8 = vld [vmem:[%s1362_s19 + $0x20] sm:$0xff]  ;;  %v656_v12 = vld [vmem:[%s1362_s19 + $0x18] sm:$0xff]  ;;  %v655_v15 = vld [vmem:[%s1362_s19 + $0x10] sm:$0xff] }
  0x36   : > { %720 = vmatpush.msrb.mxu0 %v665_v37  ;;  %761 = vmatpush.msrb.mxu1 %v681_v39  ;;  %v673_v9 = vld [vmem:[%s1362_s19 + $0xa0] sm:$0xff]  ;;  %v672_v13 = vld [vmem:[%s1362_s19 + $0x98] sm:$0xff]  ;;  %v671_v16 = vld [vmem:[%s1362_s19 + $0x90] sm:$0xff] }
  0x37   : > { %803 = vmatpush.msrb.mxu2 %v696_v40  ;;  %844 = vmatpush.msrb.mxu3 %v712_v41  ;;  %v654_v17 = vld [vmem:[%s1362_s19 + $0x8] sm:$0xff]  ;;  %v703_v19 = vld [vmem:[%s1362_s19 + $0x190] sm:$0xff]  ;;  %v669_v22 = vld [vmem:[%s1362_s19 + $0x80] sm:$0xff] }
  0x38   : > { %721 = vmatpush.msrb.mxu0 %v664_v42  ;;  %762 = vmatpush.msrb.mxu1 %v680_v43  ;;  %v670_v18 = vld [vmem:[%s1362_s19 + $0x88] sm:$0xff]  ;;  %v685_v24 = vld [vmem:[%s1362_s19 + $0x100] sm:$0xff] }
  0x39   : > { %804 = vmatpush.msrb.mxu2 %v695_v44  ;;  %845 = vmatpush.msrb.mxu3 %v711_v45  ;;  %v686_v20 = vld [vmem:[%s1362_s19 + $0x108] sm:$0xff]  ;;  %v701_v25 = vld [vmem:[%s1362_s19 + $0x180] sm:$0xff] }
  0x3a   : > { %722 = vmatpush.msrb.mxu0 %v663_v46  ;;  %763 = vmatpush.msrb.mxu1 %v679_v47  ;;  %v702_v23 = vld [vmem:[%s1362_s19 + $0x188] sm:$0xff] }
  0x3b   : > { %805 = vmatpush.msrb.mxu2 %v694_v49  ;;  %846 = vmatpush.msrb.mxu3 %v710_v50 }
  0x3c   : > { %1155 = vmatmul.msk.bf16.gmra.mxu0 %vm472_vm3, %v1178_v21  ;;  %1159 = vmatmul.msk.bf16.gmra.mxu1 %vm472_vm3, %v1178_v21 }
  0x3d   : > { %1163 = vmatmul.msk.bf16.gmra.mxu2 %vm472_vm3, %v1178_v21  ;;  %1167 = vmatmul.msk.bf16.gmra.mxu3 %vm472_vm3, %v1178_v21  ;;  %v653_v21 = vld [vmem:[%s1362_s19] sm:$0xff] }
  0x3e   : > { %723 = vmatpush.msrb.mxu0 %v662_v51  ;;  %764 = vmatpush.msrb.mxu1 %v678_v52 }
  0x3f   : > { %806 = vmatpush.msrb.mxu2 %v693_v53  ;;  %847 = vmatpush.msrb.mxu3 %v709_v54 }
  0x40   : > { %724 = vmatpush.msrb.mxu0 %v661_v55  ;;  %765 = vmatpush.msrb.mxu1 %v677_v56 }
  0x41   : > { %807 = vmatpush.msrb.mxu2 %v692_v57  ;;  %848 = vmatpush.msrb.mxu3 %v708_v58 }
  0x42   : > { %725 = vmatpush.msrb.mxu0 %v660_v59  ;;  %766 = vmatpush.msrb.mxu1 %v676_v60 }
  0x43   : > { %808 = vmatpush.msrb.mxu2 %v691_v61  ;;  %849 = vmatpush.msrb.mxu3 %v707_v62 }
  0x44   : > { %726 = vmatpush.msrb.mxu0 %v659_v63  ;;  %767 = vmatpush.msrb.mxu1 %v675_v0 }
  0x45   : > { %809 = vmatpush.msrb.mxu2 %v690_v1  ;;  %850 = vmatpush.msrb.mxu3 %v706_v2 }
  0x46   : > { %727 = vmatpush.msrb.mxu0 %v658_v4  ;;  %768 = vmatpush.msrb.mxu1 %v674_v5 }
  0x47   : > { %810 = vmatpush.msrb.mxu2 %v689_v6  ;;  %851 = vmatpush.msrb.mxu3 %v705_v7 }
  0x48   : > { %728 = vmatpush.msrb.mxu0 %v657_v8  ;;  %769 = vmatpush.msrb.mxu1 %v673_v9 }
  0x49   : > { %811 = vmatpush.msrb.mxu2 %v688_v10  ;;  %852 = vmatpush.msrb.mxu3 %v704_v11 }
  0x4a   : > { %729 = vmatpush.msrb.mxu0 %v656_v12  ;;  %770 = vmatpush.msrb.mxu1 %v672_v13 }
  0x4b   : > { %812 = vmatpush.msrb.mxu2 %v687_v14  ;;  %853 = vmatpush.msrb.mxu3 %v703_v19 }
  0x4c   : > { %1156 = vmatmul.msk.bf16.gmra.mxu0 %vm472_vm3, %v1179_v48  ;;  %1160 = vmatmul.msk.bf16.gmra.mxu1 %vm472_vm3, %v1179_v48 }
  0x4d   : > { %1164 = vmatmul.msk.bf16.gmra.mxu2 %vm472_vm3, %v1179_v48  ;;  %1168 = vmatmul.msk.bf16.gmra.mxu3 %vm472_vm3, %v1179_v48 }
  0x4e   : > { %730 = vmatpush.msrb.mxu0 %v655_v15  ;;  %771 = vmatpush.msrb.mxu1 %v671_v16 }
  0x4f   : > { %813 = vmatpush.msrb.mxu2 %v686_v20  ;;  %854 = vmatpush.msrb.mxu3 %v702_v23 }
  0x50   : > { %731 = vmatpush.msrb.mxu0 %v654_v17  ;;  %772 = vmatpush.msrb.mxu1 %v670_v18 }
  0x51   : > { %814 = vmatpush.msrb.mxu2 %v685_v24  ;;  %855 = vmatpush.msrb.mxu3 %v701_v25 }
  0x52   : > { %732 = vmatpush.msrb.mxu0 %v653_v21  ;;  %773 = vmatpush.msrb.mxu1 %v669_v22 }
  0x5c   : > { %1157 = vmatmul.msk.bf16.gmra.mxu0 %vm472_vm3, %v1180_v3  ;;  %1161 = vmatmul.msk.bf16.gmra.mxu1 %vm472_vm3, %v1180_v3 }
  0x5d   : > { %1165 = vmatmul.msk.bf16.gmra.mxu2 %vm472_vm3, %v1180_v3  ;;  %1169 = vmatmul.msk.bf16.gmra.mxu3 %vm472_vm3, %v1180_v3 }
  0x7c   : > { %v429_v8 = vpop.permute.xlu2 %428 }
  0x85   : > { %v434_v21 = vpop.permute.xlu2 %433 }
  0x92   : > { %v409_v26 = vpop.permute.xlu0 %408 }
  0x93   : > { %v419_v46 = vpop.permute.xlu1 %418 }
  0x9a   : > { %v414_v33 = vpop.permute.xlu0 %413 }
  0x9d   : > { %v424_v59 = vpop.permute.xlu1 %423 }
  0xa9   : > { %v506_v27 = vpop.f32.mrf.mxu0  ;;  %v535_v28 = vpop.f32.mrf.mxu1 }
  0xaa   : > { %v507_v29 = vadd.f32 %v506_v27, %v409_v26  ;;  %v536_v30 = vadd.f32 %v535_v28, %v409_v26 }
  0xac   : > { %v613_v31 = vmax.f32 %v507_v29, 0.0  ;;  %v614_v32 = vmax.f32 %v536_v30, 0.0 }
  0xae   : > { %733 = vmatmul.f32.vlgmr.msrb.gmra.mxu0 %v613_v31  ;;  %774 = vmatmul.f32.vlgmr.msrb.gmra.mxu1 %v614_v32 }
  0xb0   : > { %v564_v34 = vpop.f32.mrf.mxu2  ;;  %v593_v35 = vpop.f32.mrf.mxu3 }
  0xb1   : > { %v565_v36 = vadd.f32 %v564_v34, %v409_v26  ;;  %v594_v37 = vadd.f32 %v593_v35, %v409_v26  ;;  %v508_v38 = vpop.f32.mrf.mxu0  ;;  %v537_v39 = vpop.f32.mrf.mxu1 }
  0xb2   : > { %v509_v40 = vadd.f32 %v508_v38, %v414_v33  ;;  %v538_v41 = vadd.f32 %v537_v39, %v414_v33  ;;  %v439_v34 = vpop.permute.xlu0 %438 }
  0xb3   : > { %v615_v42 = vmax.f32 %v565_v36, 0.0  ;;  %v616_v43 = vmax.f32 %v594_v37, 0.0 }
  0xb4   : > { %v617_v44 = vmax.f32 %v509_v40, 0.0  ;;  %v618_v45 = vmax.f32 %v538_v41, 0.0 }
  0xb5   : > { %815 = vmatmul.f32.vlgmr.msrb.gmra.mxu2 %v615_v42  ;;  %856 = vmatmul.f32.vlgmr.msrb.gmra.mxu3 %v616_v43 }
  0xb6   : > { %736 = vmatmul.f32.gmra.mxu0 %v617_v44  ;;  %777 = vmatmul.f32.gmra.mxu1 %v618_v45 }
  0xb8   : > { %v566_v47 = vpop.f32.mrf.mxu2  ;;  %v595_v48 = vpop.f32.mrf.mxu3 }
  0xb9   : > { %v567_v49 = vadd.f32 %v566_v47, %v414_v33  ;;  %v596_v50 = vadd.f32 %v595_v48, %v414_v33  ;;  %v511_v51 = vpop.f32.mrf.mxu0  ;;  %v540_v52 = vpop.f32.mrf.mxu1 }
  0xba   : > { %v512_v53 = vadd.f32 %v511_v51, %v419_v46  ;;  %v541_v54 = vadd.f32 %v540_v52, %v419_v46  ;;  %v444_v47 = vpop.permute.xlu1 %443 }
  0xbb   : > { %v619_v55 = vmax.f32 %v567_v49, 0.0  ;;  %v620_v56 = vmax.f32 %v596_v50, 0.0 }
  0xbc   : > { %v621_v57 = vmax.f32 %v512_v53, 0.0  ;;  %v622_v58 = vmax.f32 %v541_v54, 0.0 }
  0xbd   : > { %818 = vmatmul.f32.gmra.mxu2 %v619_v55  ;;  %859 = vmatmul.f32.gmra.mxu3 %v620_v56 }
  0xbe   : > { %739 = vmatmul.f32.gmra.mxu0 %v621_v57  ;;  %780 = vmatmul.f32.gmra.mxu1 %v622_v58 }
  0xc0   : > { %v569_v60 = vpop.f32.mrf.mxu2  ;;  %v598_v61 = vpop.f32.mrf.mxu3 }
  0xc1   : > { %v570_v62 = vadd.f32 %v569_v60, %v419_v46  ;;  %v599_v63 = vadd.f32 %v598_v61, %v419_v46  ;;  %v513_v0 = vpop.f32.mrf.mxu0  ;;  %v542_v1 = vpop.f32.mrf.mxu1 }
  0xc2   : > { %v514_v2 = vadd.f32 %v513_v0, %v424_v59  ;;  %v543_v3 = vadd.f32 %v542_v1, %v424_v59 }
  0xc3   : > { %v623_v4 = vmax.f32 %v570_v62, 0.0  ;;  %v624_v5 = vmax.f32 %v599_v63, 0.0 }
  0xc4   : > { %v625_v6 = vmax.f32 %v514_v2, 0.0  ;;  %v626_v7 = vmax.f32 %v543_v3, 0.0 }
  0xc5   : > { %821 = vmatmul.f32.gmra.mxu2 %v623_v4  ;;  %862 = vmatmul.f32.gmra.mxu3 %v624_v5 }
  0xc6   : > { %742 = vmatmul.f32.gmra.mxu0 %v625_v6  ;;  %783 = vmatmul.f32.gmra.mxu1 %v626_v7 }
  0xc8   : > { %v571_v9 = vpop.f32.mrf.mxu2  ;;  %v600_v10 = vpop.f32.mrf.mxu3 }
  0xc9   : > { %v572_v11 = vadd.f32 %v571_v9, %v424_v59  ;;  %v601_v12 = vadd.f32 %v600_v10, %v424_v59  ;;  %v516_v13 = vpop.f32.mrf.mxu0  ;;  %v545_v14 = vpop.f32.mrf.mxu1  ;;  %v645_v10 = vld [vmem:[#allocation2] sm:$0xff] }
  0xca   : > { %v517_v15 = vadd.f32 %v516_v13, %v429_v8  ;;  %v546_v16 = vadd.f32 %v545_v14, %v429_v8 }
  0xcb   : > { %v627_v17 = vmax.f32 %v572_v11, 0.0  ;;  %v628_v18 = vmax.f32 %v601_v12, 0.0 }
  0xcc   : > { %v629_v19 = vmax.f32 %v517_v15, 0.0  ;;  %v630_v20 = vmax.f32 %v546_v16, 0.0 }
  0xcd   : > { %824 = vmatmul.f32.gmra.mxu2 %v627_v17  ;;  %865 = vmatmul.f32.gmra.mxu3 %v628_v18 }
  0xce   : > { %745 = vmatmul.f32.gmra.mxu0 %v629_v19  ;;  %786 = vmatmul.f32.gmra.mxu1 %v630_v20  ;;  %v646_v19 = vld [vmem:[#allocation2 + $0x8] sm:$0xff] }
  0xd0   : > { %v574_v22 = vpop.f32.mrf.mxu2  ;;  %v603_v23 = vpop.f32.mrf.mxu3 }
  0xd1   : > { %v575_v24 = vadd.f32 %v574_v22, %v429_v8  ;;  %v604_v25 = vadd.f32 %v603_v23, %v429_v8  ;;  %v518_v26 = vpop.f32.mrf.mxu0  ;;  %v547_v27 = vpop.f32.mrf.mxu1 }
  0xd2   : > { %v519_v28 = vadd.f32 %v518_v26, %v434_v21  ;;  %v548_v29 = vadd.f32 %v547_v27, %v434_v21 }
  0xd3   : > { %v631_v30 = vmax.f32 %v575_v24, 0.0  ;;  %v632_v31 = vmax.f32 %v604_v25, 0.0 }
  0xd4   : > { %v633_v32 = vmax.f32 %v519_v28, 0.0  ;;  %v634_v33 = vmax.f32 %v548_v29, 0.0  ;;  %v647_v28 = vld [vmem:[#allocation2 + $0x10] sm:$0xff] }
  0xd5   : > { %827 = vmatmul.f32.gmra.mxu2 %v631_v30  ;;  %868 = vmatmul.f32.gmra.mxu3 %v632_v31 }
  0xd6   : > { %748 = vmatmul.f32.gmra.mxu0 %v633_v32  ;;  %789 = vmatmul.f32.gmra.mxu1 %v634_v33 }
  0xd8   : > { %v576_v35 = vpop.f32.mrf.mxu2  ;;  %v605_v36 = vpop.f32.mrf.mxu3 }
  0xd9   : > { %v577_v37 = vadd.f32 %v576_v35, %v434_v21  ;;  %v606_v38 = vadd.f32 %v605_v36, %v434_v21  ;;  %v521_v39 = vpop.f32.mrf.mxu0  ;;  %v550_v40 = vpop.f32.mrf.mxu1 }
  0xda   : > { %v522_v41 = vadd.f32 %v521_v39, %v439_v34  ;;  %v551_v42 = vadd.f32 %v550_v40, %v439_v34 }
  0xdb   : > { %v635_v43 = vmax.f32 %v577_v37, 0.0  ;;  %v636_v44 = vmax.f32 %v606_v38, 0.0  ;;  %v648_v37 = vld [vmem:[#allocation2 + $0x18] sm:$0xff] }
  0xdc   : > { %v637_v45 = vmax.f32 %v522_v41, 0.0  ;;  %v638_v46 = vmax.f32 %v551_v42, 0.0 }
  0xdd   : > { %830 = vmatmul.f32.gmra.mxu2 %v635_v43  ;;  %871 = vmatmul.f32.gmra.mxu3 %v636_v44 }
  0xde   : > { %751 = vmatmul.f32.gmra.mxu0 %v637_v45  ;;  %792 = vmatmul.f32.gmra.mxu1 %v638_v46  ;;  %v649_v46 = vld [vmem:[#allocation2 + $0x20] sm:$0xff] }
  0xe0   : > { %v579_v48 = vpop.f32.mrf.mxu2  ;;  %v608_v49 = vpop.f32.mrf.mxu3 }
  0xe1   : > { %v580_v50 = vadd.f32 %v579_v48, %v439_v34  ;;  %v609_v51 = vadd.f32 %v608_v49, %v439_v34  ;;  %v523_v52 = vpop.f32.mrf.mxu0  ;;  %v552_v53 = vpop.f32.mrf.mxu1 }
  0xe2   : > { %v524_v54 = vadd.f32 %v523_v52, %v444_v47  ;;  %v553_v55 = vadd.f32 %v552_v53, %v444_v47 }
  0xe3   : > { %v639_v56 = vmax.f32 %v580_v50, 0.0  ;;  %v640_v57 = vmax.f32 %v609_v51, 0.0 }
  0xe4   : > { %v641_v58 = vmax.f32 %v524_v54, 0.0  ;;  %v642_v59 = vmax.f32 %v553_v55, 0.0  ;;  %v650_v55 = vld [vmem:[#allocation2 + $0x28] sm:$0xff] }
  0xe5   : > { %833 = vmatmul.f32.gmra.mxu2 %v639_v56  ;;  %874 = vmatmul.f32.gmra.mxu3 %v640_v57 }
  0xe6   : > { %754 = vmatmul.f32.gmra.mxu0 %v641_v58  ;;  %795 = vmatmul.f32.gmra.mxu1 %v642_v59 }
  0xe8   : > { %v581_v60 = vpop.f32.mrf.mxu2  ;;  %v610_v61 = vpop.f32.mrf.mxu3 }
  0xe9   : > { %v582_v62 = vadd.f32 %v581_v60, %v444_v47  ;;  %v611_v63 = vadd.f32 %v610_v61, %v444_v47 }
  0xeb   : > { %v643_v0 = vmax.f32 %v582_v62, 0.0  ;;  %v644_v1 = vmax.f32 %v611_v63, 0.0  ;;  %v651_v62 = vld [vmem:[#allocation2 + $0x30] sm:$0xff] }
  0xed   : > { %836 = vmatmul.f32.gmra.mxu2 %v643_v0  ;;  %877 = vmatmul.f32.gmra.mxu3 %v644_v1 }
 0x12b   : > { %v734_v2 = vpop.f32.mrf.mxu0  ;;  %v775_v3 = vpop.f32.mrf.mxu1 }
 0x12c   : > { %v776_v6 = vadd.f32 %v775_v3, %v734_v2 }
 0x133   : > { %v737_v4 = vpop.f32.mrf.mxu0  ;;  %v778_v5 = vpop.f32.mrf.mxu1 }
 0x134   : > { %v779_v15 = vadd.f32 %v778_v5, %v737_v4 }
 0x138   : > { %v816_v7 = vpop.f32.mrf.mxu2  ;;  %v857_v8 = vpop.f32.mrf.mxu3 }
 0x139   : > { %v817_v9 = vadd.f32 %v816_v7, %v776_v6  ;;  %v652_v6 = vld [vmem:[#allocation2 + $0x38] sm:$0xff] }
 0x13b   : > { %v858_v11 = vadd.f32 %v857_v8, %v817_v9  ;;  %v740_v12 = vpop.f32.mrf.mxu0  ;;  %v781_v13 = vpop.f32.mrf.mxu1 }
 0x13c   : > { %v782_v24 = vadd.f32 %v781_v13, %v740_v12 }
 0x13d   : > { %v881_v14 = vadd.f32 %v858_v11, %v645_v10 }
 0x13f   : > { %890 = vst.msk [vmem:[#allocation2] sm:$0xff] %vm889_vm4, %v881_v14 }
 0x140   : > { %v819_v16 = vpop.f32.mrf.mxu2  ;;  %v860_v17 = vpop.f32.mrf.mxu3 }
 0x141   : > { %v820_v18 = vadd.f32 %v819_v16, %v779_v15 }
 0x143   : > { %v861_v20 = vadd.f32 %v860_v17, %v820_v18  ;;  %v743_v21 = vpop.f32.mrf.mxu0  ;;  %v784_v22 = vpop.f32.mrf.mxu1 }
 0x144   : > { %v785_v33 = vadd.f32 %v784_v22, %v743_v21 }
 0x145   : > { %v882_v23 = vadd.f32 %v861_v20, %v646_v19 }
 0x147   : > { %891 = vst.msk [vmem:[#allocation2 + $0x8] sm:$0xff] %vm889_vm4, %v882_v23 }
 0x148   : > { %v822_v25 = vpop.f32.mrf.mxu2  ;;  %v863_v26 = vpop.f32.mrf.mxu3 }
 0x149   : > { %v823_v27 = vadd.f32 %v822_v25, %v782_v24 }
 0x14b   : > { %v864_v29 = vadd.f32 %v863_v26, %v823_v27  ;;  %v746_v31 = vpop.f32.mrf.mxu0  ;;  %v787_v32 = vpop.f32.mrf.mxu1 }
 0x14c   : > { %v788_v40 = vadd.f32 %v787_v32, %v746_v31 }
 0x14d   : > { %v883_v30 = vadd.f32 %v864_v29, %v647_v28 }
 0x14f   : > { %892 = vst.msk [vmem:[#allocation2 + $0x10] sm:$0xff] %vm889_vm4, %v883_v30 }
 0x150   : > { %v825_v34 = vpop.f32.mrf.mxu2  ;;  %v866_v35 = vpop.f32.mrf.mxu3 }
 0x151   : > { %v826_v36 = vadd.f32 %v825_v34, %v785_v33 }
 0x153   : > { %v867_v38 = vadd.f32 %v866_v35, %v826_v36  ;;  %v749_v41 = vpop.f32.mrf.mxu0  ;;  %v790_v42 = vpop.f32.mrf.mxu1 }
 0x154   : > { %v791_v49 = vadd.f32 %v790_v42, %v749_v41 }
 0x155   : > { %v884_v39 = vadd.f32 %v867_v38, %v648_v37 }
 0x157   : > { %893 = vst.msk [vmem:[#allocation2 + $0x18] sm:$0xff] %vm889_vm4, %v884_v39 }
 0x158   : > { %v828_v43 = vpop.f32.mrf.mxu2  ;;  %v869_v44 = vpop.f32.mrf.mxu3 }
 0x159   : > { %v829_v45 = vadd.f32 %v828_v43, %v788_v40 }
 0x15b   : > { %v870_v47 = vadd.f32 %v869_v44, %v829_v45  ;;  %v752_v53 = vpop.f32.mrf.mxu0  ;;  %v793_v54 = vpop.f32.mrf.mxu1 }
 0x15c   : > { %v794_v58 = vadd.f32 %v793_v54, %v752_v53 }
 0x15d   : > { %v885_v48 = vadd.f32 %v870_v47, %v649_v46 }
 0x15f   : > { %894 = vst.msk [vmem:[#allocation2 + $0x20] sm:$0xff] %vm889_vm4, %v885_v48 }
 0x160   : > { %v831_v50 = vpop.f32.mrf.mxu2  ;;  %v872_v51 = vpop.f32.mrf.mxu3 }
 0x161   : > { %v832_v52 = vadd.f32 %v831_v50, %v791_v49 }
 0x163   : > { %v873_v56 = vadd.f32 %v872_v51, %v832_v52  ;;  %v755_v0 = vpop.f32.mrf.mxu0  ;;  %v796_v1 = vpop.f32.mrf.mxu1 }
 0x164   : > { %v797_v3 = vadd.f32 %v796_v1, %v755_v0 }
 0x165   : > { %v886_v57 = vadd.f32 %v873_v56, %v650_v55 }
 0x167   : > { %895 = vst.msk [vmem:[#allocation2 + $0x28] sm:$0xff] %vm889_vm4, %v886_v57 }
 0x168   : > { %v834_v59 = vpop.f32.mrf.mxu2  ;;  %v875_v60 = vpop.f32.mrf.mxu3 }
 0x169   : > { %v835_v61 = vadd.f32 %v834_v59, %v794_v58 }
 0x16b   : > { %v876_v63 = vadd.f32 %v875_v60, %v835_v61 }
 0x16d   : > { %v887_v2 = vadd.f32 %v876_v63, %v651_v62 }
 0x16f   : > { %896 = vst.msk [vmem:[#allocation2 + $0x30] sm:$0xff] %vm889_vm4, %v887_v2 }
 0x170   : > { %v837_v4 = vpop.f32.mrf.mxu2  ;;  %v878_v7 = vpop.f32.mrf.mxu3 }
 0x171   : > { %v838_v5 = vadd.f32 %v837_v4, %v797_v3 }
 0x173   : > { %v879_v8 = vadd.f32 %v878_v7, %v838_v5  ;;  %901 = sbr.rel (%p1170_p7) target bundleno = 933 (0x3a5), region = 56 }
 0x175   : > { %v888_v9 = vadd.f32 %v879_v8, %v652_v6 }
 0x177   : > { %897 = vst.msk [vmem:[#allocation2 + $0x38] sm:$0xff] %vm889_vm4, %v888_v9 }
 0x178   : > { %v902_v10 = vld [vmem:[#allocation2] sm:$0xff]  ;;  %v903_v11 = vld [vmem:[#allocation2 + $0x8] sm:$0xff]  ;;  %v904_v12 = vld [vmem:[#allocation2 + $0x10] sm:$0xff]  ;;  %vm954_vm5 = vcmask 523264   ;;  %v1286_v27 = vmov 0   ;;  %vm978_vm6 = vcmask 97280   ;;  %v993_v38 = vlaneseq }
 0x179   : > { %910 = vxpose.xlu0.b32.start [1/8] (short) (narrow) %v902_v10, 8  ;;  %v905_v13 = vld [vmem:[#allocation2 + $0x18] sm:$0xff]  ;;  %v949_v14 = vld [vmem:[%s1545_s4 + $0x38] sm:$0xff]  ;;  %v948_v15 = vld [vmem:[%s1545_s4 + $0x30] sm:$0xff]  ;;  %1220 = vset.pattern.permute.xlu1 %v1286_v27  ;;  %vm1004_vm8 = vcmask 7168  }
 0x17a   : > { %966 = vmatpush.msra.mxu0 %v949_v14  ;;  %v947_v16 = vld [vmem:[%s1545_s4 + $0x28] sm:$0xff]  ;;  %v946_v17 = vld [vmem:[%s1545_s4 + $0x20] sm:$0xff]  ;;  %v945_v19 = vld [vmem:[%s1545_s4 + $0x18] sm:$0xff]  ;;  %v994_v39 = vand.u32 127, %v993_v38 }
 0x17b   : > { %v906_v18 = vld [vmem:[#allocation2 + $0x20] sm:$0xff]  ;;  %v944_v20 = vld [vmem:[%s1545_s4 + $0x10] sm:$0xff]  ;;  %v942_v22 = vld [vmem:[%s1545_s4] sm:$0xff] }
 0x17c   : > { %967 = vmatpush.msra.mxu0 %v948_v15  ;;  %v943_v21 = vld [vmem:[%s1545_s4 + $0x8] sm:$0xff]  ;;  %v907_v23 = vld [vmem:[#allocation2 + $0x28] sm:$0xff]  ;;  %v908_v24 = vld [vmem:[#allocation2 + $0x30] sm:$0xff] }
 0x17d   : > { %v1222_v28 = vld [vmem:[%s1546_s5] ss:$0 sm:$0xff] }
 0x17e   : > { %968 = vmatpush.msra.mxu0 %v947_v16  ;;  %v909_v25 = vld [vmem:[#allocation2 + $0x38] sm:$0xff] }
 0x17f   : > { %v980_v32 = vld [vmem:[%s1547_s6] sm:$0xff] }
 0x180   : > { %969 = vmatpush.msra.mxu0 %v946_v17 }
 0x181   : > { %911 = vxpose.xlu0.b32.cont [2/8] (short) (narrow) %v903_v11, 8 }
 0x182   : > { %970 = vmatpush.msra.mxu0 %v945_v19 }
 0x184   : > { %971 = vmatpush.msra.mxu0 %v944_v20 }
 0x186   : > { %972 = vmatpush.msra.mxu0 %v943_v21 }
 0x188   : > { %973 = vmatpush.msra.mxu0 %v942_v22 }
 0x189   : > { %912 = vxpose.xlu0.b32.cont [3/8] (short) (narrow) %v904_v12, 8 }
 0x191   : > { %913 = vxpose.xlu0.b32.cont [4/8] (short) (narrow) %v905_v13, 8 }
 0x199   : > { %914 = vxpose.xlu0.b32.cont [5/8] (short) (narrow) %v906_v18, 8 }
 0x1a1   : > { %915 = vxpose.xlu0.b32.cont [6/8] (short) (narrow) %v907_v23, 8 }
 0x1a9   : > { %916 = vxpose.xlu0.b32.cont [7/8] (short) (narrow) %v908_v24, 8 }
 0x1b1   : > { %917 = vxpose.xlu0.b32.end [8/8] (short) (narrow) %v909_v25, 8 }
 0x218   : > { %1221 = vset.pattern.permute.xlu0 %v1286_v27 }
 0x21d   : > { %v926_v26 = vpop.trf.xlu0 }
 0x21e   : > { %1171 = vmatmul.msk.f32.vlgmr.msra.gmra.mxu0 %vm954_vm5, %v926_v26 }
 0x29b   : > { %v975_v29 = vpop.f32.mrf.mxu0 }
 0x29c   : > { %v976_v30 = vadd.f32 %v1222_v28, %v975_v29 }
 0x29e   : > { %v981_v31 = vsel %vm978_vm6, %v976_v30, -inf  ;;  %979 = vst.msk [vmem:[#allocation3] sm:$0xff] %vm978_vm6, %v976_v30 }
 0x29f   : > { %982 = vmax.xlane.f32.xlu1 %v981_v31 }
 0x2b8   : > { %996 = vperm.xlu1 %1220, %v980_v32  }
 0x312   : > { %v983_v33 = vpop.xlane.xlu1 %982 }
 0x313   : > { %v984_v34 = vsub.f32 %v976_v30, %v983_v33 }
 0x315   : > { %v985_v35 = vmul.f32 1.442695, %v984_v34 }
 0x317   : > { %1223 = vpow2.f32 %v985_v35 }
 0x31d   : > { %v1224_v36 = vpop.eup %1223 }
 0x31e   : > { %v987_v37 = vsel %vm978_vm6, %v1224_v36, 0.0 }
 0x31f   : > { %988 = vadd.xlane.f32.xlu2 %v987_v37 }
 0x32a   : > { %v997_v40 = vpop.permute.xlu1 %996 }
 0x32b   : > { %vm998_vm7 = vcmp.eq.s32.totalorder %v994_v39, %v997_v40 }
 0x32c   : > { %v999_v41 = vsel %vm998_vm7, %v976_v30, 0.0 }
 0x32d   : > { %v1000_v42 = vsel %vm978_vm6, %v999_v41, 0.0 }
 0x32e   : > { %1001 = vadd.xlane.f32.xlu2 %v1000_v42 }
 0x392   : > { %v989_v43 = vpop.xlane.xlu2 %988 }
 0x393   : > { %1225 = vlog2.f32 %v989_v43 }
 0x399   : > { %v1226_v44 = vpop.eup %1225 }
 0x39a   : > { %v991_v45 = vmul.f32 0.6931472, %v1226_v44 }
 0x39c   : > { %v992_v46 = vadd.f32 %v991_v45, %v983_v33 }
 0x3a1   : > { %v1002_v47 = vpop.xlane.xlu2 %1001 }
 0x3a2   : > { %v1003_v48 = vsub.f32 %v992_v46, %v1002_v47 }
 0x3a4   : > { %1005 = vst.msk [vmem:[%s1549_s8] sm:$0xff] %vm1004_vm8, %v1003_v48 }
 0x3a5 PF: > { %p1185_p8 = scmp.eq.s32.totalorder %s1128_s30, 3  ;;  %s1020_s15 = sshll.u32 %s1548_s7, 4  ;;  %s1021_s15 = int_to_ptr.hbm [resolvable:$true] %s1020_s15 }
 0x3a6   : > { %s1287_s16 = smov [#allocation3]  }
 0x3a7   : > { %s1018_s17 = sshll.u32 %s1287_s16, 4  ;;  %s1019_s17 = int_to_ptr.vmem [resolvable:$true] %s1018_s17 }
 0x3a8   : > { %1182 = dma.vmem_to_hbm [thread:$0]  (%p1185_p8), %s1019_s17, 128, %s1021_s15, [#allocation4]  }
 0x3a9   : > { %1268 = dma.done.wait (%p1185_p8), [#allocation4], 128  }
 0x3aa   : > { %1270 = vsyncadd (%p1185_p8), [#allocation4], 4294967168 }
 0x3ab PF: > { %s20_s29 = sadd.s32 1, %s1281_s29   ;;  %s1550_s27 = smov %s1277_s28 }
 0x3ac   : > { %p17_p9 = scmp.ge.s32.totalorder %s20_s29, 6   ;;  %s1551_s28 = smov %s1553_s9 }
 0x3ae   :  { %19 = sbr.rel (!%p17_p9) target bundleno = 2 (0x2), region = 102 }
 0x3b3   :  { %1044 = vsyncpa [#allocation4], 1 }
 0x3b4   :  { %1046 = vsyncpa [#allocation4 + $0x1], 1 }

</bundles_post_ra>
